<compile_context>
chip_gen: v6e
topology: v6e:2x2x1
jax: 0.10.0
libtpu: 0.0.40
codegen_flags: <defaults>
</compile_context>

<pallas_src>
import jax
import jax.numpy as jnp
from jax.experimental import pallas as pl
from jax.experimental.pallas import tpu as pltpu

_SMOOTH = 1.0
_LANES = 128


def _make_kernel(C, C_pad, rows_tile, use_mxu_rsum):
    def kernel(logits_ref, labels_ref, sums_ref, dice_ref):
        b = pl.program_id(1)
        t = pl.program_id(2)

        @pl.when((b == 0) & (t == 0))
        def _init():
            sums_ref[...] = jnp.zeros_like(sums_ref)
            dice_ref[...] = jnp.zeros_like(dice_ref)

        labels_blk = labels_ref[...]                       # (R, 128) int32; padded pixels are -1
        valid = labels_blk != -1
        validf = valid.astype(jnp.float32)

        # Per-class logit slabs, f32 in-register. Padded pixels are exact zeros from the wrapper,
        # so no NaN/Inf can leak even though they are masked out of every statistic below.
        x = [logits_ref[c].astype(jnp.float32) for c in range(C)]

        # Softmax over classes: C-1 max/adds (VPU), C exps (EUP), ONE approx reciprocal (EUP).
        m = x[0]
        for c in range(1, C):
            m = jnp.maximum(m, x[c])
        ex = [jnp.exp(x[c] - m) for c in range(C)]
        denom = ex[0]
        for c in range(1, C):
            denom = denom + ex[c]
        lse = m + jnp.log(denom)
        inv_denom_v = pl.reciprocal(denom, approx=True) * validf   # hoisted valid mask

        if use_mxu_rsum:
            # Offload the (R,128)->(1,128) row reductions to the idle MXU (vex slot) instead of a
            # ~R/8-deep VALU add tree per statistic.
            ones_row = jnp.ones((1, rows_tile), jnp.float32)

            def rsum(q):
                return jnp.dot(ones_row, q, preferred_element_type=jnp.float32)
        else:
            def rsum(q):
                return jnp.sum(q, axis=0, keepdims=True)

        # Cross-entropy pick + per-class dice partial sums. `label == c` already implies validity
        # (ignored pixels carry -1), so the one-hot needs no extra mask.
        logit_at_lbl = jnp.zeros_like(m)
        inter_rows, prob_rows, onehot_rows = [], [], []
        for c in range(C):
            is_c = labels_blk == c
            probs_c = ex[c] * inv_denom_v                  # valid-masked softmax prob
            logit_at_lbl = logit_at_lbl + jnp.where(is_c, x[c], 0.0)
            inter_rows.append(rsum(jnp.where(is_c, probs_c, 0.0)))
            prob_rows.append(rsum(probs_c))
            onehot_rows.append(rsum(is_c.astype(jnp.float32)))
        ce = (lse - logit_at_lbl) * validf

        # BCE-with-logits + sigmoid on channel 0 sharing one exp; tversky target needs no mask
        # (labels <= 0, including -1, map to 0).
        x0 = x[0]
        tgt = (labels_blk > 0).astype(jnp.float32)
        e = jnp.exp(-jnp.abs(x0))
        bce = (jnp.maximum(x0, 0.0) - x0 * tgt + jnp.log(1.0 + e)) * validf
        inv1pe = pl.reciprocal(1.0 + e, approx=True)
        sig = jnp.where(x0 >= 0.0, inv1pe, e * inv1pe)
        p0 = sig * validf

        # Single full-block unmasked accumulator updates.
        zero_row = jnp.zeros((1, _LANES), jnp.float32)
        sums_upd = jnp.concatenate(
            [rsum(ce), rsum(validf), rsum(bce), rsum(p0 * tgt), rsum(p0), rsum(tgt),
             zero_row, zero_row], axis=0)                   # (8, 128)
        sums_ref[...] += sums_upd

        pad_rows = [zero_row] * (C_pad - C)
        dice_ref[0] += jnp.concatenate(inter_rows + pad_rows, axis=0)    # (C_pad, 128)
        dice_ref[1] += jnp.concatenate(prob_rows + pad_rows, axis=0)
        dice_ref[2] += jnp.concatenate(onehot_rows + pad_rows, axis=0)

    return kernel


def segmentation_loss_pallas(y_pred, y_true, loss_config,
                             max_rows_per_tile=1024,
                             vmem_input_budget=24 * 1024 * 1024,
                             input_buffer_count=2):
    """y_pred: (B, C, H, W) float logits (NCHW); y_true: (B, H, W) int labels (-1 = ignore)."""
    B, C, H, W = y_pred.shape
    assert C >= 2  # TODO(synk): C == 1 sigmoid-dice branch of dice_loss_with_logits not implemented
    HW = H * W
    rows_total = -(-HW // _LANES)

    # ---- tile sizing: biggest row tile (multiple of 8) within the double-buffered VMEM budget ----
    logit_bytes = jnp.dtype(y_pred.dtype).itemsize
    bytes_per_row = _LANES * (C * logit_bytes + 4)           # logits (all classes) + int32 labels
    budget_rows = max(8, int(vmem_input_budget // (2 * bytes_per_row)) // 8 * 8)
    rows_tile = min(budget_rows, max_rows_per_tile)

    if rows_tile >= rows_total:
        # One tile would already cover everything: split it in two (when cheaply possible) so both
        # v7x TensorCores get work; harmless on single-core v5e/v6e.
        rows_tile = rows_total // 2 if (rows_total >= 16 and rows_total % 16 == 0) else rows_total
    else:
        # Prefer a multiple-of-8 divisor of rows_total near the target: no padding, no ragged tiles.
        for cand in range(rows_tile, max(8, rows_tile // 2) - 1, -8):
            if rows_total % cand == 0:
                rows_tile = cand
                break

    num_tiles = -(-rows_total // rows_tile)
    num_splits = 2 if num_tiles >= 2 else 1                  # always engage both TCs when possible
    tiles_per_split = -(-num_tiles // num_splits)
    rows_padded = num_splits * tiles_per_split * rows_tile
    hw_padded = rows_padded * _LANES

    # ---- lane-dense layout: (B, C, rows, 128) logits / (B, rows, 128) int32 labels ----
    logits = y_pred.reshape(B, C, HW)
    labels = y_true.reshape(B, HW).astype(jnp.int32)
    if hw_padded != HW:
        # One pad covers lane alignment + tile/split alignment. Padded pixels carry label -1 and
        # zero logits, so they contribute exactly nothing to any accumulator (no in-kernel masking).
        logits = jnp.pad(logits, ((0, 0), (0, 0), (0, hw_padded - HW)))
        labels = jnp.pad(labels, ((0, 0), (0, hw_padded - HW)), constant_values=-1)
    logits = logits.reshape(B, C, rows_padded, _LANES)
    labels = labels.reshape(B, rows_padded, _LANES)

    C_pad = -(-C // 8) * 8                                   # full-sublane dice accumulator block
    use_mxu_rsum = (rows_tile % 8 == 0) and rows_tile >= 64
    kernel = _make_kernel(C, C_pad, rows_tile, use_mxu_rsum)

    logits_spec_kwargs = dict(
        block_shape=(pl.Squeezed(), C, rows_tile, _LANES),
        index_map=lambda s, b, t: (b, 0, s * tiles_per_split + t, 0))
    if input_buffer_count != 2:
        # Deeper input buffering (mainly useful on HBM-bound v5e); default double buffering else.
        logits_in_spec = pl.BlockSpec(**logits_spec_kwargs,
                                      pipeline_mode=pl.Buffered(input_buffer_count))
    else:
        logits_in_spec = pl.BlockSpec(**logits_spec_kwargs)

    per_tile_bytes = rows_tile * bytes_per_row
    vmem_limit = min(48 << 20,                               # stay inside v7x's 64 MiB physical VMEM
                     max(32 << 20, 3 * max(2, input_buffer_count) * per_tile_bytes))

    sums_out, dice_out = pl.pallas_call(
        kernel,
        out_shape=(jax.ShapeDtypeStruct((num_splits, 8, _LANES), jnp.float32),
                   jax.ShapeDtypeStruct((num_splits, 3, C_pad, _LANES), jnp.float32)),
        grid_spec=pltpu.PrefetchScalarGridSpec(
            num_scalar_prefetch=0,
            grid=(num_splits, B, tiles_per_split),
            in_specs=[
                logits_in_spec,
                pl.BlockSpec((pl.Squeezed(), rows_tile, _LANES),
                             lambda s, b, t: (b, s * tiles_per_split + t, 0)),
            ],
            out_specs=(
                pl.BlockSpec((pl.Squeezed(), 8, _LANES), lambda s, b, t: (s, 0, 0)),
                pl.BlockSpec((pl.Squeezed(), 3, C_pad, _LANES), lambda s, b, t: (s, 0, 0, 0)),
            )),
        compiler_params=pltpu.CompilerParams(
            # TODO(synk): if xprof shows the leading axis not sharding across v7x TensorCores,
            # switch it to pltpu.CORE_PARALLEL.
            dimension_semantics=("parallel", "arbitrary", "arbitrary"),
            vmem_limit_bytes=int(vmem_limit)),
    )(logits, labels)

    # ---- tiny epilogue: fold per-split, per-lane partials into scalars ----
    sums = jnp.sum(sums_out, axis=(0, 2))                    # (8,)
    dsum = jnp.sum(dice_out[:, :, :C, :], axis=(0, 3))       # (3, C)
    ce_sum, valid_cnt, bce_sum = sums[0], sums[1], sums[2]
    tp, sum_p, sum_t = sums[3], sums[4], sums[5]

    loss_dict = {}
    if 'ce' in loss_config:
        loss_dict['ce_loss'] = ce_sum / valid_cnt
    if 'bceloss' in loss_config:
        loss_dict['bceloss'] = (bce_sum / valid_cnt) * loss_config['bceloss']['scaler']
    if 'tverloss' in loss_config:
        alpha = loss_config['tverloss']['alpha']
        beta = loss_config['tverloss']['beta']
        fn = sum_t - tp
        fp = sum_p - tp
        tversky = (tp + _SMOOTH) / (tp + alpha * fn + beta * fp + _SMOOTH)
        loss_dict['tverloss'] = (1.0 - tversky) * loss_config['tverloss']['scaler']
    if 'diceloss' in loss_config:
        inter, sp, st = dsum[0], dsum[1], dsum[2]
        dcoeff = jnp.mean((2.0 * inter + _SMOOTH) / (sp + st + _SMOOTH))
        loss_dict['dice_loss'] = 1.0 - dcoeff
    return loss_dict


def reference_losses(y_pred, y_true, loss_config):
    """Pure-JAX reference mirroring the PyTorch semantics (used only to validate the kernel)."""
    B, C, H, W = y_pred.shape
    yp = jnp.transpose(y_pred, (0, 2, 3, 1)).reshape(-1, C).astype(jnp.float32)
    yt = y_true.reshape(-1).astype(jnp.int32)
    valid = yt != -1
    vf = valid.astype(jnp.float32)
    safe = jnp.where(valid, yt, 0)

    lse = jax.nn.logsumexp(yp, axis=1)
    ce = (lse - yp[jnp.arange(yp.shape[0]), safe]) * vf
    ce_loss = ce.sum() / vf.sum()

    x0 = yp[:, 0]
    t = (yt > 0).astype(jnp.float32)
    bce = (jnp.maximum(x0, 0.0) - x0 * t + jnp.log(1.0 + jnp.exp(-jnp.abs(x0)))) * vf
    bce_loss = bce.sum() / vf.sum()

    p0 = jax.nn.sigmoid(x0) * vf
    tv = t * vf
    tp = (p0 * tv).sum()
    fn = tv.sum() - tp
    fp = p0.sum() - tp
    alpha = loss_config['tverloss']['alpha']
    beta = loss_config['tverloss']['beta']
    tversky = (tp + _SMOOTH) / (tp + alpha * fn + beta * fp + _SMOOTH)

    probs = jax.nn.softmax(yp, axis=1) * vf[:, None]
    onehot = jax.nn.one_hot(safe, C) * vf[:, None]
    inter = (probs * onehot).sum(axis=0)
    z = probs.sum(axis=0) + onehot.sum(axis=0) + _SMOOTH
    dice = jnp.mean((2.0 * inter + _SMOOTH) / z)

    return {
        'ce_loss': ce_loss,
        'bceloss': bce_loss * loss_config['bceloss']['scaler'],
        'tverloss': (1.0 - tversky) * loss_config['tverloss']['scaler'],
        'dice_loss': 1.0 - dice,
    }


if __name__ == "__main__":
    loss_config = {
        'ce': {},
        'bceloss': {'scaler': 1.0},
        'tverloss': {'alpha': 0.7, 'beta': 0.3, 'scaler': 1.0},
        'diceloss': {},
    }

    def run_case(key, B, C, H, W, **kw):
        k1, k2 = jax.random.split(key)
        y_pred = jax.random.normal(k1, (B, C, H, W), dtype=jnp.float32)
        # labels in [-1, C-1]; -1 marks ignored pixels
        y_true = jax.random.randint(k2, (B, H, W), -1, C).astype(jnp.int32)

        loss_fn = jax.jit(lambda yp, yt: segmentation_loss_pallas(yp, yt, loss_config, **kw))
        out = loss_fn(y_pred, y_true)
        out = {k: jax.block_until_ready(v) for k, v in out.items()}

        ref = reference_losses(y_pred, y_true, loss_config)
        for k in out:
            # Tolerance accommodates the approx reciprocals (EUP) used in the kernel.
            assert jnp.allclose(out[k], ref[k], rtol=2e-3, atol=1e-3), (k, out[k], ref[k])

    key = jax.random.PRNGKey(0)
    ks = jax.random.split(key, 3)
    # small shape from the module spec (single tiny tile, VALU reduction path)
    run_case(ks[0], 2, 4, 16, 16)
    # multi-tile path: 2 splits x 2 tiles per split, MXU-offloaded reductions, cross-tile/batch accum
    run_case(ks[1], 2, 3, 256, 256, max_rows_per_tile=128)
    # non-128-divisible spatial size: exercises the wrapper-side padding (labels=-1, logits=0)
    run_case(ks[2], 2, 4, 20, 20)

    print("KERNEL_OK")
</pallas_src>

<mosaic_0001>
module attributes {stable_mosaic.version = 11 : i64} {
  func.func @kernel(%arg0: i32, %arg1: i32, %arg2: i32, %arg3: memref<1x4x2x128xf32, #tpu.memory_space<vmem>>, %arg4: memref<1x2x128xi32, #tpu.memory_space<vmem>>, %arg5: memref<1x8x128xf32, #tpu.memory_space<vmem>>, %arg6: memref<1x3x8x128xf32, #tpu.memory_space<vmem>>) attributes {dimension_semantics = [#tpu.dimension_semantics<parallel>, #tpu.dimension_semantics<arbitrary>, #tpu.dimension_semantics<arbitrary>], iteration_bounds = array<i64: 1, 2, 1>, scalar_prefetch = 0 : i64, scratch_operands = 0 : i64, tpu.core_type = #tpu.core_type<tc>, window_params = [{transform_indices = @transform_0, window_bounds = array<i64: 1, 4, 2, 128>}, {transform_indices = @transform_1, window_bounds = array<i64: 1, 2, 128>}, {transform_indices = @transform_2, window_bounds = array<i64: 1, 8, 128>}, {transform_indices = @transform_3, window_bounds = array<i64: 1, 3, 8, 128>}]} {
    %c0_i32 = arith.constant 0 : i32
    %0 = arith.cmpi eq, %arg1, %c0_i32 : i32
    %c0_i32_0 = arith.constant 0 : i32
    %1 = arith.cmpi eq, %arg2, %c0_i32_0 : i32
    %2 = arith.andi %0, %1 : i1
    %3 = arith.extui %2 : i1 to i32
    %c0_i32_1 = arith.constant 0 : i32
    %4 = arith.cmpi ne, %3, %c0_i32_1 : i32
    scf.if %4 {
      %cst_81 = arith.constant 0.000000e+00 : f32
      %171 = vector.broadcast %cst_81 : f32 to vector<8x128xf32>
      %c0_82 = arith.constant 0 : index
      %c0_83 = arith.constant 0 : index
      %c0_84 = arith.constant 0 : index
      %172 = vector.load %arg5[%c0_82, %c0_83, %c0_84] : memref<1x8x128xf32, #tpu.memory_space<vmem>>, vector<1x8x128xf32>
      %173 = vector.shape_cast %172 : vector<1x8x128xf32> to vector<8x128xf32>
      %174 = vector.shape_cast %171 : vector<8x128xf32> to vector<1x8x128xf32>
      tpu.vector_store %arg5[%c0_82, %c0_83, %c0_84], %174 {strides = array<i32>} : memref<1x8x128xf32, #tpu.memory_space<vmem>>, vector<1x8x128xf32>,
      %cst_85 = arith.constant 0.000000e+00 : f32
      %175 = vector.broadcast %cst_85 : f32 to vector<3x8x128xf32>
      %c0_86 = arith.constant 0 : index
      %c0_87 = arith.constant 0 : index
      %c0_88 = arith.constant 0 : index
      %c0_89 = arith.constant 0 : index
      %176 = vector.load %arg6[%c0_86, %c0_87, %c0_88, %c0_89] : memref<1x3x8x128xf32, #tpu.memory_space<vmem>>, vector<1x3x8x128xf32>
      %177 = vector.shape_cast %176 : vector<1x3x8x128xf32> to vector<3x8x128xf32>
      %178 = vector.shape_cast %175 : vector<3x8x128xf32> to vector<1x3x8x128xf32>
      tpu.vector_store %arg6[%c0_86, %c0_87, %c0_88, %c0_89], %178 {strides = array<i32>} : memref<1x3x8x128xf32, #tpu.memory_space<vmem>>, vector<1x3x8x128xf32>,
    } else {
    }
    %c0 = arith.constant 0 : index
    %c0_2 = arith.constant 0 : index
    %c0_3 = arith.constant 0 : index
    %5 = vector.load %arg4[%c0, %c0_2, %c0_3] : memref<1x2x128xi32, #tpu.memory_space<vmem>>, vector<1x2x128xi32>
    %6 = vector.shape_cast %5 : vector<1x2x128xi32> to vector<2x128xi32>
    %c-1_i32 = arith.constant -1 : i32
    %7 = vector.broadcast %c-1_i32 : i32 to vector<2x128xi32>
    %8 = arith.cmpi ne, %6, %7 : vector<2x128xi32>
    %9 = arith.extui %8 : vector<2x128xi1> to vector<2x128xi32>
    %10 = arith.sitofp %9 : vector<2x128xi32> to vector<2x128xf32>
    %c0_4 = arith.constant 0 : index
    %c0_5 = arith.constant 0 : index
    %c0_6 = arith.constant 0 : index
    %c0_7 = arith.constant 0 : index
    %11 = vector.load %arg3[%c0_4, %c0_5, %c0_6, %c0_7] : memref<1x4x2x128xf32, #tpu.memory_space<vmem>>, vector<1x1x2x128xf32>
    %12 = vector.shape_cast %11 : vector<1x1x2x128xf32> to vector<2x128xf32>
    %c0_8 = arith.constant 0 : index
    %c1 = arith.constant 1 : index
    %c0_9 = arith.constant 0 : index
    %c0_10 = arith.constant 0 : index
    %13 = vector.load %arg3[%c0_8, %c1, %c0_9, %c0_10] : memref<1x4x2x128xf32, #tpu.memory_space<vmem>>, vector<1x1x2x128xf32>
    %14 = vector.shape_cast %13 : vector<1x1x2x128xf32> to vector<2x128xf32>
    %c0_11 = arith.constant 0 : index
    %c2 = arith.constant 2 : index
    %c0_12 = arith.constant 0 : index
    %c0_13 = arith.constant 0 : index
    %15 = vector.load %arg3[%c0_11, %c2, %c0_12, %c0_13] : memref<1x4x2x128xf32, #tpu.memory_space<vmem>>, vector<1x1x2x128xf32>
    %16 = vector.shape_cast %15 : vector<1x1x2x128xf32> to vector<2x128xf32>
    %c0_14 = arith.constant 0 : index
    %c3 = arith.constant 3 : index
    %c0_15 = arith.constant 0 : index
    %c0_16 = arith.constant 0 : index
    %17 = vector.load %arg3[%c0_14, %c3, %c0_15, %c0_16] : memref<1x4x2x128xf32, #tpu.memory_space<vmem>>, vector<1x1x2x128xf32>
    %18 = vector.shape_cast %17 : vector<1x1x2x128xf32> to vector<2x128xf32>
    %19 = arith.maximumf %12, %14 : vector<2x128xf32>
    %20 = arith.maximumf %19, %16 : vector<2x128xf32>
    %21 = arith.maximumf %20, %18 : vector<2x128xf32>
    %22 = arith.subf %12, %21 : vector<2x128xf32>
    %23 = math.exp %22 : vector<2x128xf32>
    %24 = arith.subf %14, %21 : vector<2x128xf32>
    %25 = math.exp %24 : vector<2x128xf32>
    %26 = arith.subf %16, %21 : vector<2x128xf32>
    %27 = math.exp %26 : vector<2x128xf32>
    %28 = arith.subf %18, %21 : vector<2x128xf32>
    %29 = math.exp %28 : vector<2x128xf32>
    %30 = arith.addf %23, %25 : vector<2x128xf32>
    %31 = arith.addf %30, %27 : vector<2x128xf32>
    %32 = arith.addf %31, %29 : vector<2x128xf32>
    %33 = math.log %32 : vector<2x128xf32>
    %34 = arith.addf %21, %33 : vector<2x128xf32>
    %35 = tpu.reciprocal %32 {approx = true} : vector<2x128xf32> -> vector<2x128xf32>
    %36 = arith.mulf %35, %10 : vector<2x128xf32>
    %cst = arith.constant 0.000000e+00 : f32
    %37 = vector.broadcast %cst : f32 to vector<2x128xf32>
    %c0_i32_17 = arith.constant 0 : i32
    %38 = vector.broadcast %c0_i32_17 : i32 to vector<2x128xi32>
    %39 = arith.cmpi eq, %6, %38 : vector<2x128xi32>
    %40 = arith.mulf %23, %36 : vector<2x128xf32>
    %cst_18 = arith.constant 0.000000e+00 : f32
    %41 = vector.broadcast %cst_18 : f32 to vector<2x128xf32>
    %42 = arith.select %39, %12, %41 : vector<2x128xi1>, vector<2x128xf32>
    %43 = arith.addf %37, %42 : vector<2x128xf32>
    %cst_19 = arith.constant 0.000000e+00 : f32
    %44 = vector.broadcast %cst_19 : f32 to vector<2x128xf32>
    %45 = arith.select %39, %40, %44 : vector<2x128xi1>, vector<2x128xf32>
    %cst_20 = arith.constant dense<0.000000e+00> : vector<128xf32>
    %46 = vector.multi_reduction <add>, %45, %cst_20 [0] : vector<2x128xf32> to vector<128xf32>
    %47 = vector.shape_cast %46 : vector<128xf32> to vector<1x128xf32>
    %cst_21 = arith.constant dense<0.000000e+00> : vector<128xf32>
    %48 = vector.multi_reduction <add>, %40, %cst_21 [0] : vector<2x128xf32> to vector<128xf32>
    %49 = vector.shape_cast %48 : vector<128xf32> to vector<1x128xf32>
    %50 = arith.extui %39 : vector<2x128xi1> to vector<2x128xi32>
    %51 = arith.sitofp %50 : vector<2x128xi32> to vector<2x128xf32>
    %cst_22 = arith.constant dense<0.000000e+00> : vector<128xf32>
    %52 = vector.multi_reduction <add>, %51, %cst_22 [0] : vector<2x128xf32> to vector<128xf32>
    %53 = vector.shape_cast %52 : vector<128xf32> to vector<1x128xf32>
    %c1_i32 = arith.constant 1 : i32
    %54 = vector.broadcast %c1_i32 : i32 to vector<2x128xi32>
    %55 = arith.cmpi eq, %6, %54 : vector<2x128xi32>
    %56 = arith.mulf %25, %36 : vector<2x128xf32>
    %cst_23 = arith.constant 0.000000e+00 : f32
    %57 = vector.broadcast %cst_23 : f32 to vector<2x128xf32>
    %58 = arith.select %55, %14, %57 : vector<2x128xi1>, vector<2x128xf32>
    %59 = arith.addf %43, %58 : vector<2x128xf32>
    %cst_24 = arith.constant 0.000000e+00 : f32
    %60 = vector.broadcast %cst_24 : f32 to vector<2x128xf32>
    %61 = arith.select %55, %56, %60 : vector<2x128xi1>, vector<2x128xf32>
    %cst_25 = arith.constant dense<0.000000e+00> : vector<128xf32>
    %62 = vector.multi_reduction <add>, %61, %cst_25 [0] : vector<2x128xf32> to vector<128xf32>
    %63 = vector.shape_cast %62 : vector<128xf32> to vector<1x128xf32>
    %cst_26 = arith.constant dense<0.000000e+00> : vector<128xf32>
    %64 = vector.multi_reduction <add>, %56, %cst_26 [0] : vector<2x128xf32> to vector<128xf32>
    %65 = vector.shape_cast %64 : vector<128xf32> to vector<1x128xf32>
    %66 = arith.extui %55 : vector<2x128xi1> to vector<2x128xi32>
    %67 = arith.sitofp %66 : vector<2x128xi32> to vector<2x128xf32>
    %cst_27 = arith.constant dense<0.000000e+00> : vector<128xf32>
    %68 = vector.multi_reduction <add>, %67, %cst_27 [0] : vector<2x128xf32> to vector<128xf32>
    %69 = vector.shape_cast %68 : vector<128xf32> to vector<1x128xf32>
    %c2_i32 = arith.constant 2 : i32
    %70 = vector.broadcast %c2_i32 : i32 to vector<2x128xi32>
    %71 = arith.cmpi eq, %6, %70 : vector<2x128xi32>
    %72 = arith.mulf %27, %36 : vector<2x128xf32>
    %cst_28 = arith.constant 0.000000e+00 : f32
    %73 = vector.broadcast %cst_28 : f32 to vector<2x128xf32>
    %74 = arith.select %71, %16, %73 : vector<2x128xi1>, vector<2x128xf32>
    %75 = arith.addf %59, %74 : vector<2x128xf32>
    %cst_29 = arith.constant 0.000000e+00 : f32
    %76 = vector.broadcast %cst_29 : f32 to vector<2x128xf32>
    %77 = arith.select %71, %72, %76 : vector<2x128xi1>, vector<2x128xf32>
    %cst_30 = arith.constant dense<0.000000e+00> : vector<128xf32>
    %78 = vector.multi_reduction <add>, %77, %cst_30 [0] : vector<2x128xf32> to vector<128xf32>
    %79 = vector.shape_cast %78 : vector<128xf32> to vector<1x128xf32>
    %cst_31 = arith.constant dense<0.000000e+00> : vector<128xf32>
    %80 = vector.multi_reduction <add>, %72, %cst_31 [0] : vector<2x128xf32> to vector<128xf32>
    %81 = vector.shape_cast %80 : vector<128xf32> to vector<1x128xf32>
    %82 = arith.extui %71 : vector<2x128xi1> to vector<2x128xi32>
    %83 = arith.sitofp %82 : vector<2x128xi32> to vector<2x128xf32>
    %cst_32 = arith.constant dense<0.000000e+00> : vector<128xf32>
    %84 = vector.multi_reduction <add>, %83, %cst_32 [0] : vector<2x128xf32> to vector<128xf32>
    %85 = vector.shape_cast %84 : vector<128xf32> to vector<1x128xf32>
    %c3_i32 = arith.constant 3 : i32
    %86 = vector.broadcast %c3_i32 : i32 to vector<2x128xi32>
    %87 = arith.cmpi eq, %6, %86 : vector<2x128xi32>
    %88 = arith.mulf %29, %36 : vector<2x128xf32>
    %cst_33 = arith.constant 0.000000e+00 : f32
    %89 = vector.broadcast %cst_33 : f32 to vector<2x128xf32>
    %90 = arith.select %87, %18, %89 : vector<2x128xi1>, vector<2x128xf32>
    %91 = arith.addf %75, %90 : vector<2x128xf32>
    %cst_34 = arith.constant 0.000000e+00 : f32
    %92 = vector.broadcast %cst_34 : f32 to vector<2x128xf32>
    %93 = arith.select %87, %88, %92 : vector<2x128xi1>, vector<2x128xf32>
    %cst_35 = arith.constant dense<0.000000e+00> : vector<128xf32>
    %94 = vector.multi_reduction <add>, %93, %cst_35 [0] : vector<2x128xf32> to vector<128xf32>
    %95 = vector.shape_cast %94 : vector<128xf32> to vector<1x128xf32>
    %cst_36 = arith.constant dense<0.000000e+00> : vector<128xf32>
    %96 = vector.multi_reduction <add>, %88, %cst_36 [0] : vector<2x128xf32> to vector<128xf32>
    %97 = vector.shape_cast %96 : vector<128xf32> to vector<1x128xf32>
    %98 = arith.extui %87 : vector<2x128xi1> to vector<2x128xi32>
    %99 = arith.sitofp %98 : vector<2x128xi32> to vector<2x128xf32>
    %cst_37 = arith.constant dense<0.000000e+00> : vector<128xf32>
    %100 = vector.multi_reduction <add>, %99, %cst_37 [0] : vector<2x128xf32> to vector<128xf32>
    %101 = vector.shape_cast %100 : vector<128xf32> to vector<1x128xf32>
    %102 = arith.subf %34, %91 : vector<2x128xf32>
    %103 = arith.mulf %102, %10 : vector<2x128xf32>
    %c0_i32_38 = arith.constant 0 : i32
    %104 = vector.broadcast %c0_i32_38 : i32 to vector<2x128xi32>
    %105 = arith.cmpi sgt, %6, %104 : vector<2x128xi32>
    %106 = arith.extui %105 : vector<2x128xi1> to vector<2x128xi32>
    %107 = arith.sitofp %106 : vector<2x128xi32> to vector<2x128xf32>
    %108 = math.absf %12 : vector<2x128xf32>
    %cst_39 = arith.constant 0.000000e+00 : f32
    %109 = vector.broadcast %cst_39 : f32 to vector<2x128xf32>
    %110 = arith.subf %109, %108 : vector<2x128xf32>
    %111 = math.exp %110 : vector<2x128xf32>
    %cst_40 = arith.constant 0.000000e+00 : f32
    %112 = vector.broadcast %cst_40 : f32 to vector<2x128xf32>
    %113 = arith.maximumf %12, %112 : vector<2x128xf32>
    %114 = arith.mulf %12, %107 : vector<2x128xf32>
    %115 = arith.subf %113, %114 : vector<2x128xf32>
    %cst_41 = arith.constant 1.000000e+00 : f32
    %116 = vector.broadcast %cst_41 : f32 to vector<2x128xf32>
    %117 = arith.addf %116, %111 : vector<2x128xf32>
    %118 = math.log %117 : vector<2x128xf32>
    %119 = arith.addf %115, %118 : vector<2x128xf32>
    %120 = arith.mulf %119, %10 : vector<2x128xf32>
    %cst_42 = arith.constant 1.000000e+00 : f32
    %121 = vector.broadcast %cst_42 : f32 to vector<2x128xf32>
    %122 = arith.addf %121, %111 : vector<2x128xf32>
    %123 = tpu.reciprocal %122 {approx = true} : vector<2x128xf32> -> vector<2x128xf32>
    %cst_43 = arith.constant 0.000000e+00 : f32
    %124 = vector.broadcast %cst_43 : f32 to vector<2x128xf32>
    %125 = arith.cmpf oge, %12, %124 : vector<2x128xf32>
    %126 = arith.mulf %111, %123 : vector<2x128xf32>
    %127 = arith.select %125, %123, %126 : vector<2x128xi1>, vector<2x128xf32>
    %128 = arith.mulf %127, %10 : vector<2x128xf32>
    %cst_44 = arith.constant 0.000000e+00 : f32
    %129 = vector.broadcast %cst_44 : f32 to vector<1x128xf32>
    %cst_45 = arith.constant dense<0.000000e+00> : vector<128xf32>
    %130 = vector.multi_reduction <add>, %103, %cst_45 [0] : vector<2x128xf32> to vector<128xf32>
    %131 = vector.shape_cast %130 : vector<128xf32> to vector<1x128xf32>
    %cst_46 = arith.constant dense<0.000000e+00> : vector<128xf32>
    %132 = vector.multi_reduction <add>, %10, %cst_46 [0] : vector<2x128xf32> to vector<128xf32>
    %133 = vector.shape_cast %132 : vector<128xf32> to vector<1x128xf32>
    %cst_47 = arith.constant dense<0.000000e+00> : vector<128xf32>
    %134 = vector.multi_reduction <add>, %120, %cst_47 [0] : vector<2x128xf32> to vector<128xf32>
    %135 = vector.shape_cast %134 : vector<128xf32> to vector<1x128xf32>
    %136 = arith.mulf %128, %107 : vector<2x128xf32>
    %cst_48 = arith.constant dense<0.000000e+00> : vector<128xf32>
    %137 = vector.multi_reduction <add>, %136, %cst_48 [0] : vector<2x128xf32> to vector<128xf32>
    %138 = vector.shape_cast %137 : vector<128xf32> to vector<1x128xf32>
    %cst_49 = arith.constant dense<0.000000e+00> : vector<128xf32>
    %139 = vector.multi_reduction <add>, %128, %cst_49 [0] : vector<2x128xf32> to vector<128xf32>
    %140 = vector.shape_cast %139 : vector<128xf32> to vector<1x128xf32>
    %cst_50 = arith.constant dense<0.000000e+00> : vector<128xf32>
    %141 = vector.multi_reduction <add>, %107, %cst_50 [0] : vector<2x128xf32> to vector<128xf32>
    %142 = vector.shape_cast %141 : vector<128xf32> to vector<1x128xf32>
    %143 = tpu.concatenate %131, %133, %135, %138, %140, %142, %129, %129 in 0 : vector<1x128xf32>, vector<1x128xf32>, vector<1x128xf32>, vector<1x128xf32>, vector<1x128xf32>, vector<1x128xf32>, vector<1x128xf32>, vector<1x128xf32> -> vector<8x128xf32>
    %c0_51 = arith.constant 0 : index
    %c0_52 = arith.constant 0 : index
    %c0_53 = arith.constant 0 : index
    %144 = vector.load %arg5[%c0_51, %c0_52, %c0_53] : memref<1x8x128xf32, #tpu.memory_space<vmem>>, vector<1x8x128xf32>
    %145 = vector.shape_cast %144 : vector<1x8x128xf32> to vector<8x128xf32>
    %146 = arith.addf %145, %143 : vector<8x128xf32>
    %c0_54 = arith.constant 0 : index
    %c0_55 = arith.constant 0 : index
    %c0_56 = arith.constant 0 : index
    %147 = vector.load %arg5[%c0_54, %c0_55, %c0_56] : memref<1x8x128xf32, #tpu.memory_space<vmem>>, vector<1x8x128xf32>
    %148 = vector.shape_cast %147 : vector<1x8x128xf32> to vector<8x128xf32>
    %149 = vector.shape_cast %146 : vector<8x128xf32> to vector<1x8x128xf32>
    tpu.vector_store %arg5[%c0_54, %c0_55, %c0_56], %149 {strides = array<i32>} : memref<1x8x128xf32, #tpu.memory_space<vmem>>, vector<1x8x128xf32>,
    %c0_57 = arith.constant 0 : index
    %c0_58 = arith.constant 0 : index
    %c0_59 = arith.constant 0 : index
    %c0_60 = arith.constant 0 : index
    %150 = vector.load %arg6[%c0_57, %c0_58, %c0_59, %c0_60] : memref<1x3x8x128xf32, #tpu.memory_space<vmem>>, vector<1x1x8x128xf32>
    %151 = vector.shape_cast %150 : vector<1x1x8x128xf32> to vector<8x128xf32>
    %152 = tpu.concatenate %47, %63, %79, %95, %129, %129, %129, %129 in 0 : vector<1x128xf32>, vector<1x128xf32>, vector<1x128xf32>, vector<1x128xf32>, vector<1x128xf32>, vector<1x128xf32>, vector<1x128xf32>, vector<1x128xf32> -> vector<8x128xf32>
    %153 = arith.addf %151, %152 : vector<8x128xf32>
    %c0_61 = arith.constant 0 : index
    %c0_62 = arith.constant 0 : index
    %c0_63 = arith.constant 0 : index
    %c0_64 = arith.constant 0 : index
    %154 = vector.load %arg6[%c0_61, %c0_62, %c0_63, %c0_64] : memref<1x3x8x128xf32, #tpu.memory_space<vmem>>, vector<1x1x8x128xf32>
    %155 = vector.shape_cast %154 : vector<1x1x8x128xf32> to vector<8x128xf32>
    %156 = vector.shape_cast %153 : vector<8x128xf32> to vector<1x1x8x128xf32>
    tpu.vector_store %arg6[%c0_61, %c0_62, %c0_63, %c0_64], %156 {strides = array<i32>} : memref<1x3x8x128xf32, #tpu.memory_space<vmem>>, vector<1x1x8x128xf32>,
    %c0_65 = arith.constant 0 : index
    %c1_66 = arith.constant 1 : index
    %c0_67 = arith.constant 0 : index
    %c0_68 = arith.constant 0 : index
    %157 = vector.load %arg6[%c0_65, %c1_66, %c0_67, %c0_68] : memref<1x3x8x128xf32, #tpu.memory_space<vmem>>, vector<1x1x8x128xf32>
    %158 = vector.shape_cast %157 : vector<1x1x8x128xf32> to vector<8x128xf32>
    %159 = tpu.concatenate %49, %65, %81, %97, %129, %129, %129, %129 in 0 : vector<1x128xf32>, vector<1x128xf32>, vector<1x128xf32>, vector<1x128xf32>, vector<1x128xf32>, vector<1x128xf32>, vector<1x128xf32>, vector<1x128xf32> -> vector<8x128xf32>
    %160 = arith.addf %158, %159 : vector<8x128xf32>
    %c0_69 = arith.constant 0 : index
    %c1_70 = arith.constant 1 : index
    %c0_71 = arith.constant 0 : index
    %c0_72 = arith.constant 0 : index
    %161 = vector.load %arg6[%c0_69, %c1_70, %c0_71, %c0_72] : memref<1x3x8x128xf32, #tpu.memory_space<vmem>>, vector<1x1x8x128xf32>
    %162 = vector.shape_cast %161 : vector<1x1x8x128xf32> to vector<8x128xf32>
    %163 = vector.shape_cast %160 : vector<8x128xf32> to vector<1x1x8x128xf32>
    tpu.vector_store %arg6[%c0_69, %c1_70, %c0_71, %c0_72], %163 {strides = array<i32>} : memref<1x3x8x128xf32, #tpu.memory_space<vmem>>, vector<1x1x8x128xf32>,
    %c0_73 = arith.constant 0 : index
    %c2_74 = arith.constant 2 : index
    %c0_75 = arith.constant 0 : index
    %c0_76 = arith.constant 0 : index
    %164 = vector.load %arg6[%c0_73, %c2_74, %c0_75, %c0_76] : memref<1x3x8x128xf32, #tpu.memory_space<vmem>>, vector<1x1x8x128xf32>
    %165 = vector.shape_cast %164 : vector<1x1x8x128xf32> to vector<8x128xf32>
    %166 = tpu.concatenate %53, %69, %85, %101, %129, %129, %129, %129 in 0 : vector<1x128xf32>, vector<1x128xf32>, vector<1x128xf32>, vector<1x128xf32>, vector<1x128xf32>, vector<1x128xf32>, vector<1x128xf32>, vector<1x128xf32> -> vector<8x128xf32>
    %167 = arith.addf %165, %166 : vector<8x128xf32>
    %c0_77 = arith.constant 0 : index
    %c2_78 = arith.constant 2 : index
    %c0_79 = arith.constant 0 : index
    %c0_80 = arith.constant 0 : index
    %168 = vector.load %arg6[%c0_77, %c2_78, %c0_79, %c0_80] : memref<1x3x8x128xf32, #tpu.memory_space<vmem>>, vector<1x1x8x128xf32>
    %169 = vector.shape_cast %168 : vector<1x1x8x128xf32> to vector<8x128xf32>
    %170 = vector.shape_cast %167 : vector<8x128xf32> to vector<1x1x8x128xf32>
    tpu.vector_store %arg6[%c0_77, %c2_78, %c0_79, %c0_80], %170 {strides = array<i32>} : memref<1x3x8x128xf32, #tpu.memory_space<vmem>>, vector<1x1x8x128xf32>,
    return
  }
  func.func @transform_0(%arg0: i32, %arg1: i32, %arg2: i32) -> (i32, i32, i32, i32) {
    %c1_i32 = arith.constant 1 : i32
    %0 = arith.muli %arg0, %c1_i32 : i32
    %1 = arith.addi %0, %arg2 : i32
    %c0_i32 = arith.constant 0 : i32
    %c0_i32_0 = arith.constant 0 : i32
    %c0_i32_1 = arith.constant 0 : i32
    return %arg1, %c0_i32, %1, %c0_i32_0 : i32, i32, i32, i32
  }
  func.func @transform_1(%arg0: i32, %arg1: i32, %arg2: i32) -> (i32, i32, i32) {
    %c1_i32 = arith.constant 1 : i32
    %0 = arith.muli %arg0, %c1_i32 : i32
    %1 = arith.addi %0, %arg2 : i32
    %c0_i32 = arith.constant 0 : i32
    %c0_i32_0 = arith.constant 0 : i32
    return %arg1, %1, %c0_i32 : i32, i32, i32
  }
  func.func @transform_2(%arg0: i32, %arg1: i32, %arg2: i32) -> (i32, i32, i32) {
    %c0_i32 = arith.constant 0 : i32
    %c0_i32_0 = arith.constant 0 : i32
    %c0_i32_1 = arith.constant 0 : i32
    return %arg0, %c0_i32, %c0_i32_0 : i32, i32, i32
  }
  func.func @transform_3(%arg0: i32, %arg1: i32, %arg2: i32) -> (i32, i32, i32, i32) {
    %c0_i32 = arith.constant 0 : i32
    %c0_i32_0 = arith.constant 0 : i32
    %c0_i32_1 = arith.constant 0 : i32
    %c0_i32_2 = arith.constant 0 : i32
    return %arg0, %c0_i32, %c0_i32_0, %c0_i32_1 : i32, i32, i32, i32
  }
}

</mosaic_0001>

<bundles_post_ra>
// kernel: _lambda_.1
= control target key start
LH: loop header
LB: loop body
LE: loop exit
PB: predicated region body
PF: predicated region fallthrough
CT: control target
= control target key end

     0   :  { %s754_s12 = smov 0   ;;  %s756_s13 = smov 0   ;;  %s970_s0 = inlined_call_operand.vmem [shape: f32[2,4,2,128], index: 0, kind: input, shape index: {}]   ;;  %s971_s1 = inlined_call_operand.vmem [shape: s32[2,2,128], index: 1, kind: input, shape index: {}]   ;;  %s972_s2 = inlined_call_operand.vmem [shape: f32[1,8,128], index: 2, kind: output, shape index: {0}]   ;;  %s973_s3 = inlined_call_operand.vmem [shape: f32[1,3,8,128], index: 3, kind: output, shape index: {1}]  }
   0x1   :  { %s758_s14 = smov 0  }
   0x2 LB: > { %s29_s15 = sadd.s32 1, %s726_s13  ;;  %p640_p0 = scmp.ge.s32.totalorder %s730_s14, 1  ;;  %s730_s14 = sphi %s758_s14, %s14_s14   ;;  %s726_s13 = sphi %s756_s13, %s975_s13   ;;  %s722_s12 = sphi %s754_s12, %s974_s12  }
   0x3   : > { %p31_p1 = scmp.ge.s32.totalorder %s29_s15, 2  ;;  %p186_p2 = scmp.lt.s32.totalorder %s730_s14, 3 }
   0x5   : > { %s977_s15 = smov (%p31_p1, %s29_s15), 0  ;;  %p187_p3 = pnand %p640_p0, %p186_p2 }
   0x6   : > { %p227_p4 = scmp.lt.s32.totalorder (!%p187_p3), %s722_s12, 1  ;;  %p254_p5 = scmp.eq.s32.totalorder (!%p187_p3), %s722_s12, 0 }
   0x7   : > { %190 = sbr.rel (%p187_p3) target bundleno = 104 (0x68), region = 28 }
   0xc   : > { %s979_s12 = smov (!%p227_p4, %s722_s12), 1  ;;  %259 = sbr.rel (!%p254_p5) target bundleno = 17 (0x11), region = 32  ;;  %v732_v0 = vmov (%p254_p5), 0.0  }
   0xd   : > { %s662_s16 = sshll.u32 %s979_s12, 3  ;;  %s643_s17 = sshll.u32 %s979_s12, 1  ;;  %260 = vst [vmem:[%s972_s2] sm:$0xff] (%p254_p5), %v732_v0  ;;  %261 = vst [vmem:[%s973_s3] sm:$0xff] (%p254_p5), %v732_v0 }
   0xe   : > { %s234_s20 = scalar_lea.vmem %s970_s0, %s662_s16  ;;  %s243_s23 = scalar_lea.vmem %s971_s1, %s643_s17  ;;  %262 = vst [vmem:[%s973_s3 + $0x8] sm:$0xff] (%p254_p5), %v732_v0  ;;  %263 = vst [vmem:[%s973_s3 + $0x10] sm:$0xff] (%p254_p5), %v732_v0 }
  0x11 PF: > { %v790_v1 = vld [vmem:[%s234_s20] sm:$0x3]  ;;  %v792_v2 = vld [vmem:[%s234_s20 + $0x2] sm:$0x3]  ;;  %v794_v3 = vld [vmem:[%s234_s20 + $0x4] sm:$0x3] }
  0x12   : > { %v275_v4 = vmax.f32 %v790_v1, %v792_v2  ;;  %v798_v5 = vld [vmem:[%s234_s20 + $0x6] sm:$0x3]  ;;  %v416_v7 = vand.u32 2147483647, %v790_v1  ;;  %v813_v14 = vld [vmem:[%s243_s23] sm:$0x3] }
  0x13   : > { %vm303_vm0 = vcmask 1041408   ;;  %vm298_vm1 = vcmp.eq.s32.totalorder %v813_v14, 0  ;;  %vm327_vm2 = vcmp.eq.s32.totalorder %v813_v14, 1  ;;  %v733_v20 = vmov 0.0  }
  0x14   : > { %v276_v6 = vmax.f32 %v275_v4, %v794_v3  ;;  %v417_v9 = vsub.f32 0.0, %v416_v7  ;;  %v649_v21 = vsel %vm298_vm1, 1.0, %v733_v20  ;;  %v650_v22 = vsel %vm327_vm2, 1.0, %v733_v20 }
  0x15   : > { %vm355_vm3 = vcmp.eq.s32.totalorder %v813_v14, 2  ;;  %vm383_vm4 = vcmp.eq.s32.totalorder %v813_v14, 3  ;;  %v320_v23 = vsel %vm303_vm0, %v649_v21, 0.0  ;;  %v348_v25 = vsel %vm303_vm0, %v650_v22, 0.0 }
  0x16   : > { %v803_v8 = vmax.f32 %v276_v6, %v798_v5  ;;  %v418_v15 = vmul.f32 1.442695, %v417_v9  ;;  %v321_v24 = vrot.slane %v320_v23, 4  ;;  %v651_v26 = vsel %vm355_vm3, 1.0, %v733_v20 }
  0x17   : > { %v652_v27 = vsel %vm383_vm4, 1.0, %v733_v20  ;;  %v349_v28 = vrot.slane %v348_v25, 4  ;;  %v376_v29 = vsel %vm303_vm0, %v651_v26, 0.0  ;;  %vm265_vm5 = vcmp.ne.s32.totalorder %v813_v14, 4294967295 }
  0x18   : > { %v278_v10 = vsub.f32 %v790_v1, %v803_v8  ;;  %v281_v11 = vsub.f32 %v792_v2, %v803_v8  ;;  %v284_v12 = vsub.f32 %v794_v3, %v803_v8  ;;  %v287_v13 = vsub.f32 %v798_v5, %v803_v8 }
  0x19   : > { %690 = vpow2.f32 %v418_v15  ;;  %v322_v30 = vadd.f32 %v321_v24, %v320_v23  ;;  %v377_v31 = vrot.slane %v376_v29, 4  ;;  %v404_v32 = vsel %vm303_vm0, %v652_v27, 0.0 }
  0x1a   : > { %v279_v16 = vmul.f32 1.442695, %v278_v10  ;;  %v282_v17 = vmul.f32 1.442695, %v281_v11  ;;  %v285_v18 = vmul.f32 1.442695, %v284_v12  ;;  %v350_v33 = vadd.f32 %v349_v28, %v348_v25 }
  0x1b   : > { %v288_v19 = vmul.f32 1.442695, %v287_v13  ;;  %v405_v34 = vrot.slane %v404_v32, 4  ;;  %v323_v35 = vrot.slane %v322_v30, 2  ;;  %v378_v36 = vadd.f32 %v377_v31, %v376_v29 }
  0x1c   : > { %692 = vpow2.f32 %v279_v16  ;;  %vm413_vm6 = vcmp.gt.s32.totalorder %v813_v14, 0  ;;  %v351_v37 = vrot.slane %v350_v33, 2  ;;  %v833_v39 = vsel %vm265_vm5, 1.0, %v733_v20  ;;  %v656_v16 = vld [vmem:[%s973_s3 + $0x10] sm:$0xff] }
  0x1d   : > { %694 = vpow2.f32 %v282_v17  ;;  %v406_v38 = vadd.f32 %v405_v34, %v404_v32  ;;  %v324_v40 = vadd.f32 %v323_v35, %v322_v30  ;;  %v379_v41 = vrot.slane %v378_v36, 2 }
  0x1e   : > { %696 = vpow2.f32 %v285_v18  ;;  %v440_v42 = vsel %vm303_vm0, %v833_v39, 0.0  ;;  %v352_v43 = vadd.f32 %v351_v37, %v350_v33  ;;  %v837_v46 = vsel %vm413_vm6, 1.0, %v733_v20 }
  0x1f   : > { %698 = vpow2.f32 %v288_v19  ;;  %v407_v44 = vrot.slane %v406_v38, 2  ;;  %v325_v47 = vrot.slane %v324_v40, 1  ;;  %v380_v48 = vadd.f32 %v379_v41, %v378_v36 }
  0x20   : > { %v469_v51 = vsel %vm303_vm0, %v837_v46, 0.0  ;;  %v353_v52 = vrot.slane %v352_v43, 1  ;;  %v441_v55 = vrot.slane %v440_v42, 4  ;;  %vm476_vm7 = vcmask 1040384  }
  0x21   : > { %v408_v53 = vadd.f32 %v407_v44, %v406_v38  ;;  %v326_v56 = vadd.f32 %v325_v47, %v324_v40  ;;  %v381_v57 = vrot.slane %v380_v48, 1  ;;  %v470_v63 = vrot.slane %v469_v51, 4 }
  0x22   : > { %v354_v60 = vadd.f32 %v353_v52, %v352_v43  ;;  %vm479_vm8 = vcmask 1042432   ;;  %vm481_vm9 = vcmask 1043456   ;;  %vm483_vm10 = vcmask 1044480  }
  0x23   : > { %v409_v61 = vrot.slane %v408_v53, 1  ;;  %v382_v0 = vadd.f32 %v381_v57, %v380_v48  ;;  %vm485_vm11 = vcmask 1045504   ;;  %vm487_vm12 = vcmask 1046528  }
  0x24   : > { %v515_v7 = vsel %vm476_vm7, %v326_v56, %v354_v60  ;;  %v442_v13 = vadd.f32 %v441_v55, %v440_v42  ;;  %v471_v15 = vadd.f32 %v470_v63, %v469_v51  ;;  %v300_v18 = vsel %vm298_vm1, %v790_v1, 0.0 }
  0x25   : > { %v410_v6 = vadd.f32 %v409_v61, %v408_v53  ;;  %v516_v9 = vsel %vm303_vm0, %v515_v7, %v382_v0  ;;  %v329_v20 = vsel %vm327_vm2, %v792_v2, 0.0  ;;  %v420_v21 = vmax.f32 %v790_v1, 0.0 }
  0x26   : > { %v691_v45 = vpop.eup %690  ;;  %v421_v22 = vmul.f32 %v837_v46, %v790_v1  ;;  %v443_v25 = vrot.slane %v442_v13, 2  ;;  %v472_v26 = vrot.slane %v471_v15, 2  ;;  %v330_v27 = vadd.f32 %v329_v20, %v300_v18 }
  0x27   : > { %v423_v50 = vadd.f32 1.0, %v691_v45  ;;  %v517_v11 = vsel %vm479_vm8, %v516_v9, %v410_v6  ;;  %v357_v28 = vsel %vm355_vm3, %v794_v3, 0.0  ;;  %vm429_vm13 = vcmp.ge.f32.partialorder %v790_v1, 0.0 }
  0x28   : > { %v518_v12 = vsel %vm481_vm9, %v517_v11, 0.0  ;;  %v422_v2 = vsub.f32 %v420_v21, %v421_v22  ;;  %v444_v32 = vadd.f32 %v443_v25, %v442_v13  ;;  %v473_v33 = vadd.f32 %v472_v26, %v471_v15 }
  0x29   : > { %v839_v49 = vpop.eup %692  ;;  %700 = vlog2.f32 %v423_v50  ;;  %v519_v17 = vsel %vm483_vm10, %v518_v12, 0.0  ;;  %v358_v34 = vadd.f32 %v357_v28, %v330_v27  ;;  %v385_v36 = vsel %vm383_vm4, %v798_v5, 0.0 }
  0x2a   : > { %v843_v54 = vpop.eup %694  ;;  %702 = vrcp.f32 %v423_v50  ;;  %v520_v19 = vsel %vm485_vm11, %v519_v17, 0.0  ;;  %v445_v41 = vrot.slane %v444_v32, 1  ;;  %v474_v42 = vrot.slane %v473_v33, 1 }
  0x2b   : > { %v845_v58 = vpop.eup %696  ;;  %v290_v59 = vadd.f32 %v843_v54, %v839_v49  ;;  %v521_v23 = vsel %vm487_vm12, %v520_v19, 0.0  ;;  %v386_v44 = vadd.f32 %v385_v36, %v358_v34 }
  0x2c   : > { %v849_v62 = vpop.eup %698  ;;  %v522_v24 = vadd.f32 %v656_v16, %v521_v23  ;;  %v889_v55 = vadd.f32 %v445_v41, %v444_v32  ;;  %v892_v57 = vadd.f32 %v474_v42, %v473_v33 }
  0x2d   : > { %v291_v4 = vadd.f32 %v845_v58, %v290_v59 }
  0x2e   : > { %657 = vst [vmem:[%s973_s3 + $0x10] sm:$0xff] %v522_v24 }
  0x2f   : > { %v292_v10 = vadd.f32 %v849_v62, %v291_v4 }
  0x31   : > { %704 = vlog2.f32 %v292_v10 }
  0x32   : > { %706 = vrcp.f32 %v292_v10 }
  0x36   : > { %v701_v29 = vpop.eup %700 }
  0x37   : > { %v703_v30 = vpop.eup %702  ;;  %v425_v31 = vmul.f32 0.6931472, %v701_v29 }
  0x38   : > { %v430_v35 = vmul.f32 %v703_v30, %v691_v45 }
  0x39   : > { %v426_v37 = vadd.f32 %v425_v31, %v422_v2 }
  0x3a   : > { %v431_v38 = vsel %vm429_vm13, %v703_v30, %v430_v35 }
  0x3b   : > { %v427_v40 = vmul.f32 %v833_v39, %v426_v37  ;;  %v432_v3 = vmul.f32 %v833_v39, %v431_v38 }
  0x3d   : > { %v447_v48 = vsel %vm303_vm0, %v427_v40, 0.0  ;;  %v454_v45 = vmul.f32 %v837_v46, %v432_v3  ;;  %v462_v50 = vsel %vm303_vm0, %v432_v3, 0.0 }
  0x3e   : > { %v705_v43 = vpop.eup %704  ;;  %v448_v51 = vrot.slane %v447_v48, 4  ;;  %v463_v5 = vrot.slane %v462_v50, 4 }
  0x3f   : > { %v707_v47 = vpop.eup %706  ;;  %v294_v1 = vmul.f32 0.6931472, %v705_v43  ;;  %v455_v56 = vsel %vm303_vm0, %v454_v45, 0.0 }
  0x40   : > { %v297_v52 = vmul.f32 %v707_v47, %v833_v39  ;;  %v449_v59 = vadd.f32 %v448_v51, %v447_v48  ;;  %v456_v60 = vrot.slane %v455_v56, 4  ;;  %v464_v61 = vadd.f32 %v463_v5, %v462_v50 }
  0x41   : > { %v295_v53 = vadd.f32 %v294_v1, %v803_v8 }
  0x42   : > { %v299_v63 = vmul.f32 %v839_v49, %v297_v52  ;;  %v328_v0 = vmul.f32 %v843_v54, %v297_v52  ;;  %v356_v4 = vmul.f32 %v845_v58, %v297_v52  ;;  %v898_v6 = vmul.f32 %v849_v62, %v297_v52 }
  0x43   : > { %v411_v46 = vsub.f32 %v295_v53, %v386_v44  ;;  %v450_v8 = vrot.slane %v449_v59, 2  ;;  %v457_v7 = vadd.f32 %v456_v60, %v455_v56  ;;  %v465_v9 = vrot.slane %v464_v61, 2 }
  0x44   : > { %v302_v10 = vsel %vm298_vm1, %v299_v63, 0.0  ;;  %v331_v49 = vsel %vm327_vm2, %v328_v0, 0.0  ;;  %v359_v54 = vsel %vm355_vm3, %v356_v4, 0.0  ;;  %v311_v35 = vsel %vm303_vm0, %v299_v63, 0.0 }
  0x45   : > { %v412_v11 = vmul.f32 %v833_v39, %v411_v46  ;;  %v304_v12 = vsel %vm303_vm0, %v302_v10, 0.0  ;;  %v451_v58 = vadd.f32 %v450_v8, %v449_v59  ;;  %v458_v13 = vrot.slane %v457_v7, 2 }
  0x46   : > { %v466_v62 = vadd.f32 %v465_v9, %v464_v61  ;;  %v305_v15 = vrot.slane %v304_v12, 4  ;;  %v332_v17 = vsel %vm303_vm0, %v331_v49, 0.0  ;;  %v360_v18 = vsel %vm303_vm0, %v359_v54, 0.0 }
  0x47   : > { %v433_v16 = vsel %vm303_vm0, %v412_v11, 0.0  ;;  %v387_v39 = vsel %vm383_vm4, %v898_v6, 0.0  ;;  %v452_v20 = vrot.slane %v451_v58, 1  ;;  %v459_v21 = vadd.f32 %v458_v13, %v457_v7 }
  0x48   : > { %v434_v19 = vrot.slane %v433_v16, 4  ;;  %v467_v22 = vrot.slane %v466_v62, 1  ;;  %v306_v23 = vadd.f32 %v305_v15, %v304_v12  ;;  %v333_v24 = vrot.slane %v332_v17, 4 }
  0x49   : > { %v361_v25 = vrot.slane %v360_v18, 4  ;;  %v388_v26 = vsel %vm303_vm0, %v387_v39, 0.0  ;;  %v453_v28 = vadd.f32 %v452_v20, %v451_v58  ;;  %v460_v2 = vrot.slane %v459_v21, 1 }
  0x4a   : > { %v435_v27 = vadd.f32 %v434_v19, %v433_v16  ;;  %v468_v29 = vadd.f32 %v467_v22, %v466_v62  ;;  %v307_v30 = vrot.slane %v306_v23, 2  ;;  %v334_v31 = vadd.f32 %v333_v24, %v332_v17 }
  0x4b   : > { %v362_v32 = vadd.f32 %v361_v25, %v360_v18  ;;  %v389_v33 = vrot.slane %v388_v26, 4  ;;  %v461_v14 = vadd.f32 %v460_v2, %v459_v21  ;;  %v339_v36 = vsel %vm303_vm0, %v328_v0, 0.0  ;;  %v489_v21 = vld [vmem:[%s972_s2] sm:$0xff] }
  0x4c   : > { %v436_v34 = vrot.slane %v435_v27, 2  ;;  %v308_v37 = vadd.f32 %v307_v30, %v306_v23  ;;  %v335_v38 = vrot.slane %v334_v31, 2  ;;  %v312_v42 = vrot.slane %v311_v35, 4 }
  0x4d   : > { %v363_v40 = vrot.slane %v362_v32, 2  ;;  %v390_v3 = vadd.f32 %v389_v33, %v388_v26  ;;  %v340_v43 = vrot.slane %v339_v36, 4  ;;  %v367_v44 = vsel %vm303_vm0, %v356_v4, 0.0  ;;  %v492_v26 = vld [vmem:[%s973_s3] sm:$0xff] }
  0x4e   : > { %v437_v41 = vadd.f32 %v436_v34, %v435_v27  ;;  %v309_v47 = vrot.slane %v308_v37, 1  ;;  %v336_v1 = vadd.f32 %v335_v38, %v334_v31  ;;  %v313_v51 = vadd.f32 %v312_v42, %v311_v35 }
  0x4f   : > { %v364_v48 = vadd.f32 %v363_v40, %v362_v32  ;;  %v391_v45 = vrot.slane %v390_v3, 2  ;;  %v341_v5 = vadd.f32 %v340_v43, %v339_v36  ;;  %v368_v52 = vrot.slane %v367_v44, 4 }
  0x50   : > { %v438_v50 = vrot.slane %v437_v41, 1  ;;  %v310_v53 = vadd.f32 %v309_v47, %v308_v37  ;;  %v337_v56 = vrot.slane %v336_v1, 1  ;;  %v314_v63 = vrot.slane %v313_v51, 2 }
  0x51   : > { %v365_v59 = vrot.slane %v364_v48, 1  ;;  %v392_v60 = vadd.f32 %v391_v45, %v390_v3  ;;  %v342_v46 = vrot.slane %v341_v5, 2  ;;  %v369_v0 = vadd.f32 %v368_v52, %v367_v44  ;;  %v654_v3 = vld [vmem:[%s973_s3 + $0x8] sm:$0xff] }
  0x52   : > { %v439_v61 = vadd.f32 %v438_v50, %v437_v41  ;;  %v338_v8 = vadd.f32 %v337_v56, %v336_v1  ;;  %v395_v4 = vsel %vm303_vm0, %v898_v6, 0.0  ;;  %v315_v11 = vadd.f32 %v314_v63, %v313_v51 }
  0x53   : > { %v366_v7 = vadd.f32 %v365_v59, %v364_v48  ;;  %v393_v9 = vrot.slane %v392_v60, 1  ;;  %v343_v12 = vadd.f32 %v342_v46, %v341_v5  ;;  %v370_v49 = vrot.slane %v369_v0, 2 }
  0x54   : > { %v477_v10 = vsel %vm476_vm7, %v439_v61, %v889_v55  ;;  %v493_v13 = vsel %vm476_vm7, %v310_v53, %v338_v8  ;;  %v396_v62 = vrot.slane %v395_v4, 4  ;;  %v316_v17 = vrot.slane %v315_v11, 1 }
  0x55   : > { %v478_v54 = vsel %vm303_vm0, %v477_v10, %v453_v28  ;;  %v394_v58 = vadd.f32 %v393_v9, %v392_v60  ;;  %v494_v16 = vsel %vm303_vm0, %v493_v13, %v366_v7  ;;  %v344_v18 = vrot.slane %v343_v12, 1 }
  0x56   : > { %v480_v15 = vsel %vm479_vm8, %v478_v54, %v461_v14  ;;  %v371_v55 = vadd.f32 %v370_v49, %v369_v0  ;;  %v397_v19 = vadd.f32 %v396_v62, %v395_v4  ;;  %v317_v23 = vadd.f32 %v316_v17, %v315_v11 }
  0x57   : > { %v482_v6 = vsel %vm481_vm9, %v480_v15, %v468_v29  ;;  %v495_v39 = vsel %vm479_vm8, %v494_v16, %v394_v58  ;;  %v345_v24 = vadd.f32 %v344_v18, %v343_v12 }
  0x58   : > { %v484_v20 = vsel %vm483_vm10, %v482_v6, %v892_v57  ;;  %v496_v22 = vsel %vm481_vm9, %v495_v39, 0.0  ;;  %v372_v28 = vrot.slane %v371_v55, 1  ;;  %v398_v2 = vrot.slane %v397_v19, 2 }
  0x59   : > { %v486_v25 = vsel %vm485_vm11, %v484_v20, 0.0  ;;  %v497_v27 = vsel %vm483_vm10, %v496_v22, 0.0  ;;  %v504_v30 = vsel %vm476_vm7, %v317_v23, %v345_v24 }
  0x5a   : > { %v488_v57 = vsel %vm487_vm12, %v486_v25, 0.0  ;;  %v498_v29 = vsel %vm485_vm11, %v497_v27, 0.0  ;;  %v373_v33 = vadd.f32 %v372_v28, %v371_v55  ;;  %v399_v34 = vadd.f32 %v398_v2, %v397_v19 }
  0x5b   : > { %v490_v31 = vadd.f32 %v489_v21, %v488_v57  ;;  %v499_v32 = vsel %vm487_vm12, %v498_v29, 0.0 }
  0x5c   : > { %v500_v14 = vadd.f32 %v499_v32, %v492_v26  ;;  %v400_v35 = vrot.slane %v399_v34, 1  ;;  %v505_v36 = vsel %vm303_vm0, %v504_v30, %v373_v33 }
  0x5d   : > { %491 = vst [vmem:[%s972_s2] sm:$0xff] %v490_v31 }
  0x5e   : > { %501 = vst [vmem:[%s973_s3] sm:$0xff] %v500_v14  ;;  %v401_v37 = vadd.f32 %v400_v35, %v399_v34 }
  0x60   : > { %v506_v38 = vsel %vm479_vm8, %v505_v36, %v401_v37 }
  0x61   : > { %v507_v40 = vsel %vm481_vm9, %v506_v38, 0.0 }
  0x62   : > { %v508_v41 = vsel %vm483_vm10, %v507_v40, 0.0 }
  0x63   : > { %v509_v42 = vsel %vm485_vm11, %v508_v41, 0.0 }
  0x64   : > { %v510_v43 = vsel %vm487_vm12, %v509_v42, 0.0 }
  0x65   : > { %v511_v44 = vadd.f32 %v654_v3, %v510_v43 }
  0x67   : > { %655 = vst [vmem:[%s973_s3 + $0x8] sm:$0xff] %v511_v44 }
  0x68 PF: > { %s14_s14 = sadd.s32 1, %s730_s14   ;;  %s974_s12 = smov %s726_s13 }
  0x69   : > { %p11_p6 = scmp.ge.s32.totalorder %s14_s14, 4   ;;  %s975_s13 = smov %s977_s15 }
  0x6b   :  { %13 = sbr.rel (!%p11_p6) target bundleno = 2 (0x2), region = 82 }

</bundles_post_ra>
